<compile_context>
chip_gen: v5e
topology: v5e:2x2
jax: 0.10.0
libtpu: 0.0.40
codegen_flags: <defaults>
</compile_context>

<pallas_src>
import functools

import jax
import jax.numpy as jnp
from jax import lax
from jax.experimental import pallas as pl
from jax.experimental.pallas import tpu as pltpu


_SQRT_HALF = 0.7071067811865476


def _gelu_exact(x):
    # PyTorch nn.GELU() default (erf-based, exact).
    # TODO(synk): switch to the tanh approximation (EUP slot) on v5e only if bundle
    # profiling shows the erf polynomial is the binding VALU slot for small Cin.
    return 0.5 * x * (1.0 + lax.erf(x * _SQRT_HALF))


def _round_up(x, m):
    return -(-x // m) * m


# ----------------------------- hardware introspection -------------------------------- #

@functools.lru_cache(maxsize=None)
def _hw():
    """(vmem capacity, small-VMEM chip?, working-set budget, vmem_limit_bytes)."""
    try:
        cap = int(pltpu.get_tpu_info().vmem_capacity_bytes)
    except Exception:
        cap = 64 * 1024 * 1024            # conservative fallback (v7x per-core VMEM)
    small_vmem = cap <= 96 * 1024 * 1024  # v7x-like (64 MiB/core); v5e/v6e have 128 MiB
    budget = int(cap * 0.55)              # working-set budget (weights single-buffered)
    vmem_limit = int(cap * 0.85)          # scoped VMEM limit (headroom kept in `fixed`)
    return cap, small_vmem, budget, vmem_limit


@functools.lru_cache(maxsize=None)
def _buffered1_ok():
    """AOT probe (lower + compile only, never dispatched): single-buffered weights?"""
    try:
        mode = pl.Buffered(1)

        def _probe(x_ref, w_ref, o_ref):
            o_ref[...] = x_ref[...] + w_ref[...]

        f = pl.pallas_call(
            _probe,
            out_shape=jax.ShapeDtypeStruct((16, 128), jnp.float32),
            grid=(2,),
            in_specs=[pl.BlockSpec((8, 128), lambda i: (i, 0)),
                      pl.BlockSpec((8, 128), lambda i: (0, 0), pipeline_mode=mode)],
            out_specs=pl.BlockSpec((8, 128), lambda i: (i, 0)),
        )
        jax.jit(f).lower(jax.ShapeDtypeStruct((16, 128), jnp.float32),
                         jax.ShapeDtypeStruct((8, 128), jnp.float32)).compile()
        return True
    except Exception:
        return False


def _spec(shape, index_map, single_buffer):
    if single_buffer and _buffered1_ok():
        return pl.BlockSpec(shape, index_map, pipeline_mode=pl.Buffered(1))
    return pl.BlockSpec(shape, index_map)


def _const_spec(shape):
    """Grid-invariant operand: whole array, single-buffered when supported."""
    return _spec(shape, lambda *_: (0,) * len(shape), True)


def _const_nbuf():
    return 1 if _buffered1_ok() else 2


# ----------------------------- tiling heuristic --------------------------------------- #

def _pick_row_tile(p, per_row_bytes, fixed_bytes, budget_bytes, *,
                   prefer_even_steps=False, cap=1024):
    """Row tile for a (rows, lanes) kernel.

    Aligned to 256/128 rows (MXU M) when the VMEM budget allows, always zero-padding
    rather than hunting for exact divisors of `p`.  `prefer_even_steps` (v7x, 2 TCs)
    nudges toward an even grid-step count.  Returns (tile, pad_rows).
    """
    avail = max(budget_bytes - fixed_bytes, 8 * per_row_bytes)
    max_rows = int(min(cap, max(8, avail // max(per_row_bytes, 1))))
    max_rows = max(8, (max_rows // 8) * 8)
    if max_rows >= p:
        tile = _round_up(p, 8)
        if prefer_even_steps and p > 8:
            tile = _round_up(_round_up(p, 16) // 2, 8)     # two balanced steps
    else:
        a = 256 if max_rows >= 512 else (128 if max_rows >= 128 else 8)
        tile = max(a, (max_rows // a) * a)
        if prefer_even_steps:
            steps = -(-p // tile)
            if steps % 2 == 1:
                tile = max(a, min(tile, _round_up(-(-p // (steps + 1)), a)))
    steps = -(-p // tile)
    return tile, steps * tile - p


# ----------------------------- Pallas kernels ----------------------------------------- #

def _up2x_kernel(x_ref, w_ref, b_ref, o_ref):
    # x: (TP, Cin); w: (Cin, 4*Cout) bf16 (slot k = 2*di + dj on lanes); b: (1, 4*Cout);
    # o: (TP, 4*Cout).  One wide lane-dense MXU matmul per grid step.
    x = x_ref[...].astype(jnp.bfloat16)
    y = jnp.dot(x, w_ref[...], preferred_element_type=jnp.float32)
    o_ref[...] = (y + b_ref[...]).astype(o_ref.dtype)


def _up4x_kernel(x_ref, w1_ref, a_ref, c_ref, w2_ref, b2_ref, o_ref):
    # Fused ConvT(2,2) -> folded SyncBatchNorm(eval) -> GELU -> ConvT(2,2), lane-dense.
    # x: (TP, Cin); w1: (Cin, G*Cin) bf16; a, c: (1, G*Cin); w2: (Cin, 4*Cout) bf16;
    # b2: (1, 4*Cout); o: (TP, G*4*Cout).  G = number of first-stage offsets handled
    # by this lane tile (4 normally, 2 when lane-tiled on small-VMEM chips).
    cin = w2_ref.shape[0]
    cout = w2_ref.shape[1] // 4
    gsz = w1_ref.shape[1] // cin
    x = x_ref[...].astype(jnp.bfloat16)
    z = jnp.dot(x, w1_ref[...], preferred_element_type=jnp.float32)   # (TP, G*Cin)
    z = z * a_ref[...] + c_ref[...]            # conv bias + BN (eval) pre-folded
    z = _gelu_exact(z).astype(jnp.bfloat16)
    b2 = b2_ref[...]                           # hoisted out of the unrolled loop
    # TODO(synk): if the Mosaic dump shows w2 re-pushed to the MXU per unrolled dot,
    # hold it resident via pltpu.matmul_push_rhs / matmul_acc_lhs (MRB on v7x).
    for k in range(gsz):
        zk = z[:, k * cin:(k + 1) * cin]
        y = jnp.dot(zk, w2_ref[...], preferred_element_type=jnp.float32) + b2
        o_ref[:, k * 4 * cout:(k + 1) * 4 * cout] = y.astype(o_ref.dtype)


def _maxpool_kernel(x_ref, sel_ref, o_ref):
    # x: (TQ, R, W) (a free NCHW view: rows = N*C*Ho); sel: (W, R*Wo) 0/1 selection;
    # o: (TQ, Wo).  H-window rows reduce over axis 1; the W-window reduce is a
    # lane-selection matmul (column s*Wo + jo picks lane jo*R + s) + elementwise max.
    r = x_ref.shape[1]
    wo = o_ref.shape[-1]
    x = jnp.max(x_ref[...].astype(jnp.float32), axis=1)               # (TQ, W)
    g = jnp.dot(x, sel_ref[...], preferred_element_type=jnp.float32)  # (TQ, R*Wo)
    m = g[:, 0:wo]
    for s in range(1, r):
        m = jnp.maximum(m, g[:, s * wo:(s + 1) * wo])
    o_ref[...] = m.astype(o_ref.dtype)


# ----------------------------- Wrappers (glue) ----------------------------------------- #

def _finalize_2x(y, n, h, w, cout, layout):
    y = y.reshape(n, h, w, 2, 2, cout)                      # (n, h, w, di, dj, c)
    if layout == "nhwc":
        y = jnp.transpose(y, (0, 1, 3, 2, 4, 5)).reshape(n, 2 * h, 2 * w, cout)
    else:
        y = jnp.transpose(y, (0, 5, 1, 3, 2, 4)).reshape(n, cout, 2 * h, 2 * w)
    return y


def conv_transpose2x(x_nhwc, w_cat, b_cat, *, out_dtype=jnp.float32, layout="nchw"):
    n, h, w, cin = x_nhwc.shape
    cout = w_cat.shape[1] // 4
    p = n * h * w
    xm = x_nhwc.reshape(p, cin)
    _, small_vmem, budget, vmem_limit = _hw()
    osz = jnp.dtype(out_dtype).itemsize
    per_row = 2 * cin * 4 + cin * 2 + 4 * cout * 4 + 2 * 4 * cout * osz
    fixed = _const_nbuf() * (w_cat.size * 2 + b_cat.size * 4) + (2 << 20)
    tp, pad = _pick_row_tile(p, per_row, fixed, budget, prefer_even_steps=small_vmem)
    if pad:
        xm = jnp.pad(xm, ((0, pad), (0, 0)))
    pp = p + pad
    cost = pl.CostEstimate(
        flops=2 * p * cin * 4 * cout,
        transcendentals=0,
        bytes_accessed=p * cin * 4 + w_cat.size * 2 + b_cat.size * 4 + p * 4 * cout * osz)
    y = pl.pallas_call(
        _up2x_kernel,
        out_shape=jax.ShapeDtypeStruct((pp, 4 * cout), out_dtype),
        grid=(pp // tp,),
        in_specs=[pl.BlockSpec((tp, cin), lambda i: (i, 0)),
                  _const_spec((cin, 4 * cout)),
                  _const_spec((1, 4 * cout))],
        out_specs=pl.BlockSpec((tp, 4 * cout), lambda i: (i, 0)),
        compiler_params=pltpu.CompilerParams(
            dimension_semantics=("parallel",), vmem_limit_bytes=vmem_limit),
        cost_estimate=cost,
    )(xm, w_cat, b_cat)
    y = y[:p] if pad else y
    return _finalize_2x(y, n, h, w, cout, layout)


def _finalize_4x(y, n, h, w, cout, layout):
    y = y.reshape(n, h, w, 2, 2, 2, 2, cout)                # (n, h, w, di1, dj1, di2, dj2, c)
    if layout == "nhwc":
        y = jnp.transpose(y, (0, 1, 3, 5, 2, 4, 6, 7)).reshape(n, 4 * h, 4 * w, cout)
    else:
        y = jnp.transpose(y, (0, 7, 1, 3, 5, 2, 4, 6)).reshape(n, cout, 4 * h, 4 * w)
    return y


def up4x_fused(x_nhwc, w1_cat, a1, c1, w2_cat, b2_cat, *,
               out_dtype=jnp.float32, layout="nchw"):
    n, h, w, cin = x_nhwc.shape
    cout = w2_cat.shape[1] // 4
    p = n * h * w
    xm = x_nhwc.reshape(p, cin)
    _, small_vmem, budget, vmem_limit = _hw()
    osz = jnp.dtype(out_dtype).itemsize

    # Lane tiling over the 4 first-stage offsets (k1): halves per-step output slab and
    # w1 residency on small-VMEM (v7x-like) chips, with zero redundant FLOPs.
    lt = 2 if (small_vmem and cin >= 512) else 1
    gsz = 4 // lt

    per_row = (2 * cin * 4 + cin * 2                 # x f32 x2 buffers + bf16 copy
               + gsz * cin * 4 + gsz * cin * 2       # z f32 + z bf16
               + 4 * cout * 4                        # per-offset stage-2 result
               + 2 * gsz * 4 * cout * osz)           # out block x2 buffers
    w1_nbuf = _const_nbuf() if lt == 1 else 2
    fixed = (w1_nbuf * cin * gsz * cin * 2
             + _const_nbuf() * w2_cat.size * 2
             + (3 << 20))                            # biases + internal scratch headroom
    tp, pad = _pick_row_tile(p, per_row, fixed, budget,
                             prefer_even_steps=(small_vmem and lt == 1))
    if pad:
        xm = jnp.pad(xm, ((0, pad), (0, 0)))
    pp = p + pad

    cost = pl.CostEstimate(
        flops=p * (8 * cin * cin + 32 * cin * cout),
        transcendentals=p * 4 * cin,
        bytes_accessed=lt * p * cin * 4 + (w1_cat.size + w2_cat.size) * 2
                       + p * 16 * cout * osz)

    # TODO(synk): for channel counts that are not multiples of 128, pad Cin/Cout at
    # weight-packing time so the in-kernel z slices stay lane-aligned.
    in_specs = [
        pl.BlockSpec((tp, cin), lambda j, i: (i, 0)),
        _spec((cin, gsz * cin), lambda j, i: (0, j), lt == 1),
        _spec((1, gsz * cin), lambda j, i: (0, j), lt == 1),
        _spec((1, gsz * cin), lambda j, i: (0, j), lt == 1),
        _const_spec((cin, 4 * cout)),
        _const_spec((1, 4 * cout)),
    ]
    y = pl.pallas_call(
        _up4x_kernel,
        out_shape=jax.ShapeDtypeStruct((pp, 16 * cout), out_dtype),
        grid=(lt, pp // tp),
        in_specs=in_specs,
        out_specs=pl.BlockSpec((tp, gsz * 4 * cout), lambda j, i: (i, j)),
        compiler_params=pltpu.CompilerParams(
            dimension_semantics=("parallel", "parallel"),
            vmem_limit_bytes=vmem_limit),
        cost_estimate=cost,
    )(xm, w1_cat, a1, c1, w2_cat, b2_cat)
    y = y[:p] if pad else y
    return _finalize_4x(y, n, h, w, cout, layout)


def maxpool_nchw(x_nchw, r):
    """MaxPool2d(kernel=r, stride=r) computed directly from NCHW (no transposes)."""
    n, c, h, w = x_nchw.shape
    ho, wo = h // r, w // r
    # TODO(synk): floor behavior (trailing rows/cols dropped), matching nn.MaxPool2d.
    x = x_nchw[:, :, :ho * r, :wo * r]
    wv = wo * r
    x = x.reshape(n * c * ho, r, wv)                 # free view of NCHW
    q = n * c * ho

    # 0/1 selection matrix: column s*Wo + jo picks input lane jo*r + s.
    lane = jnp.arange(wv)[:, None]
    col = jnp.arange(r * wo)[None, :]
    sel = (lane == (col % wo) * r + (col // wo)).astype(jnp.float32)

    _, small_vmem, budget, vmem_limit = _hw()
    slab = _round_up(r, 8) * _round_up(wv, 128) * 4          # padded VMEM slab per row
    per_row = (2 * slab + _round_up(wv, 128) * 4 + _round_up(r * wo, 128) * 4
               + 2 * _round_up(wo, 128) * 4)
    fixed = _const_nbuf() * sel.size * 4 + (2 << 20)
    tq, pad = _pick_row_tile(q, per_row, fixed, budget, prefer_even_steps=small_vmem)
    if pad:
        x = jnp.pad(x, ((0, pad), (0, 0), (0, 0)))
    qq = q + pad
    y = pl.pallas_call(
        _maxpool_kernel,
        out_shape=jax.ShapeDtypeStruct((qq, wo), x_nchw.dtype),
        grid=(qq // tq,),
        in_specs=[pl.BlockSpec((tq, r, wv), lambda i: (i, 0, 0)),
                  _const_spec((wv, r * wo))],
        out_specs=pl.BlockSpec((tq, wo), lambda i: (i, 0)),
        compiler_params=pltpu.CompilerParams(
            dimension_semantics=("parallel",), vmem_limit_bytes=vmem_limit),
    )(x, sel)
    y = y[:q] if pad else y
    return y.reshape(n, c, ho, wo)


# ----------------------------- Module --------------------------------------------------- #

class Feature2PyramidPallas:
    """JAX/Pallas re-implementation of Feature2Pyramid (NCHW in, NCHW out by default).

    conv_out_dtype / out_layout only affect the 4x/2x upsample branches: bf16 and/or
    NHWC outputs cut the dominant HBM writeback + layout-transpose traffic, but the
    defaults (f32, "nchw") preserve the PyTorch forward semantics exactly.
    """

    def __init__(self, embed_dims, rescales=(4, 2, 1, 0.5), key=None,
                 conv_out_dtype=jnp.float32, out_layout="nchw"):
        assert len(embed_dims) == len(rescales)
        assert out_layout in ("nchw", "nhwc")
        self.rescales = tuple(rescales)
        self.conv_out_dtype = conv_out_dtype
        self.out_layout = out_layout
        if key is None:
            key = jax.random.PRNGKey(0)
        self.params = []
        eps = 1e-5
        for i, k in enumerate(self.rescales):
            cdim = int(embed_dims[i])
            key, *ks = jax.random.split(key, 9)
            bound = 1.0 / float((cdim * 2 * 2) ** 0.5)
            if k == 4:
                # Weights generated in the PyTorch (Cin, Cout, 2, 2) layout, then packed
                # lane-concatenated (slot k = 2*di + dj) and stored bf16.
                w1_pt = jax.random.uniform(ks[0], (cdim, cdim, 2, 2), jnp.float32, -bound, bound)
                b1 = jax.random.uniform(ks[1], (1, cdim), jnp.float32, -bound, bound)
                w2_pt = jax.random.uniform(ks[2], (cdim, cdim, 2, 2), jnp.float32, -bound, bound)
                b2 = jax.random.uniform(ks[3], (1, cdim), jnp.float32, -bound, bound)
                gamma = 1.0 + 0.1 * jax.random.uniform(ks[4], (1, cdim), jnp.float32)
                beta = 0.1 * jax.random.uniform(ks[5], (1, cdim), jnp.float32, -1.0, 1.0)
                rmean = 0.1 * jax.random.uniform(ks[6], (1, cdim), jnp.float32, -1.0, 1.0)
                rvar = 1.0 + 0.1 * jax.random.uniform(ks[7], (1, cdim), jnp.float32)
                scale = gamma * lax.rsqrt(rvar + eps)
                shift = beta - rmean * scale
                w1 = self.pack_convtranspose_weight(w1_pt)
                w2 = self.pack_convtranspose_weight(w2_pt)
                self.params.append(dict(
                    # kernel-ready forms (conv bias + BN folded into a1/c1)
                    w1=w1.astype(jnp.bfloat16),
                    a1=jnp.tile(scale, (1, 4)),
                    c1=jnp.tile(scale * b1 + shift, (1, 4)),
                    w2=w2.astype(jnp.bfloat16),
                    b2=jnp.tile(b2, (1, 4)),
                    # raw pieces kept for the pure-JAX reference
                    b1=b1, gamma=gamma, beta=beta, rmean=rmean, rvar=rvar, eps=eps))
            elif k == 2:
                w_pt = jax.random.uniform(ks[0], (cdim, cdim, 2, 2), jnp.float32, -bound, bound)
                b = jax.random.uniform(ks[1], (1, cdim), jnp.float32, -bound, bound)
                self.params.append(dict(
                    w=self.pack_convtranspose_weight(w_pt).astype(jnp.bfloat16),
                    b=jnp.tile(b, (1, 4))))
            elif k in (1, 0.5, 0.25):
                self.params.append(None)
            else:
                raise KeyError(f"invalid {k} for feature2pyramid")

    @staticmethod
    def pack_convtranspose_weight(w_pt):
        """PyTorch ConvTranspose2d weight (Cin, Cout, 2, 2) -> (Cin, 4*Cout), slot k=2*di+dj."""
        cin, cout = w_pt.shape[0], w_pt.shape[1]
        return jnp.transpose(w_pt, (0, 2, 3, 1)).reshape(cin, 4 * cout)

    def __call__(self, inputs_nchw):
        assert len(inputs_nchw) == len(self.rescales)
        outs = []
        for i, k in enumerate(self.rescales):
            x = inputs_nchw[i]
            p = self.params[i]
            if k == 4:
                x_nhwc = jnp.transpose(x, (0, 2, 3, 1))
                y = up4x_fused(x_nhwc, p["w1"], p["a1"], p["c1"], p["w2"], p["b2"],
                               out_dtype=self.conv_out_dtype, layout=self.out_layout)
            elif k == 2:
                x_nhwc = jnp.transpose(x, (0, 2, 3, 1))
                y = conv_transpose2x(x_nhwc, p["w"], p["b"],
                                     out_dtype=self.conv_out_dtype, layout=self.out_layout)
            elif k == 1:
                y = x                       # identity: no layout round-trip
            elif k == 0.5:
                y = maxpool_nchw(x, 2)
            else:                           # k == 0.25
                y = maxpool_nchw(x, 4)
            outs.append(y)
        return tuple(outs)


# ----------------------------- Pure-JAX reference (self-check) -------------------------- #

def _convT_ref(x_nhwc, w_cat, b_row):
    n, h, w, cin = x_nhwc.shape
    cout = w_cat.shape[1] // 4
    wk = w_cat.astype(jnp.float32).reshape(cin, 2, 2, cout)   # (cin, di, dj, cout)
    y = jnp.einsum("nhwc,cijd->nhiwjd", x_nhwc, wk) + b_row.reshape(cout)
    return y.reshape(n, 2 * h, 2 * w, cout)


def _reference(module, inputs_nchw):
    outs = []
    for i, k in enumerate(module.rescales):
        x = inputs_nchw[i]
        p = module.params[i]
        if k == 4:
            c = x.shape[1]
            xh = jnp.transpose(x, (0, 2, 3, 1))
            y = _convT_ref(xh, p["w1"], p["b1"][0])
            scale = p["gamma"][0] * lax.rsqrt(p["rvar"][0] + p["eps"])
            y = (y - p["rmean"][0]) * scale + p["beta"][0]
            y = _gelu_exact(y)
            y = _convT_ref(y, p["w2"], p["b2"][0, :c])
            y = jnp.transpose(y, (0, 3, 1, 2))
        elif k == 2:
            c = x.shape[1]
            xh = jnp.transpose(x, (0, 2, 3, 1))
            y = _convT_ref(xh, p["w"], p["b"][0, :c])
            y = jnp.transpose(y, (0, 3, 1, 2))
        elif k == 1:
            y = x
        else:
            r = 2 if k == 0.5 else 4
            n, c, h, w = x.shape
            ho, wo = h // r, w // r
            y = x[:, :, :ho * r, :wo * r].reshape(n, c, ho, r, wo, r).max(axis=(3, 5))
        outs.append(y)
    return tuple(outs)


# ----------------------------- Demo ------------------------------------------------------ #

if __name__ == "__main__":
    key = jax.random.PRNGKey(0)
    N, C, H, W = 2, 16, 8, 8
    embed_dims = [C, C, C, C]
    rescales = (4, 2, 1, 0.5)

    k_in, k_mod = jax.random.split(key)
    in_keys = jax.random.split(k_in, 4)
    inputs = [jax.random.normal(in_keys[i], (N, C, H, W), jnp.float32) for i in range(4)]

    module = Feature2PyramidPallas(embed_dims, rescales, key=k_mod)

    outs = module(inputs)
    outs = jax.block_until_ready(outs)

    expected = [(N, C, 4 * H, 4 * W), (N, C, 2 * H, 2 * W), (N, C, H, W), (N, C, H // 2, W // 2)]
    for o, s in zip(outs, expected):
        assert o.shape == s, (o.shape, s)

    refs = _reference(module, inputs)
    for o, r in zip(outs, refs):
        err = float(jnp.max(jnp.abs(o.astype(jnp.float32) - r)))
        # bf16 MXU matmuls vs f32 reference -> loosened tolerance (documented contract).
        assert jnp.allclose(o, r, atol=2e-2, rtol=2e-2), err

    print("KERNEL_OK")
</pallas_src>

<mosaic_0001>
module attributes {stable_mosaic.version = 11 : i64} {
  func.func @_up4x_kernel(%arg0: i32, %arg1: i32, %arg2: memref<64x16xf32, #tpu.memory_space<vmem>>, %arg3: memref<16x64xbf16, #tpu.memory_space<vmem>>, %arg4: memref<1x64xf32, #tpu.memory_space<vmem>>, %arg5: memref<1x64xf32, #tpu.memory_space<vmem>>, %arg6: memref<16x64xbf16, #tpu.memory_space<vmem>>, %arg7: memref<1x64xf32, #tpu.memory_space<vmem>>, %arg8: memref<64x256xf32, #tpu.memory_space<vmem>>) attributes {dimension_semantics = [#tpu.dimension_semantics<parallel>, #tpu.dimension_semantics<parallel>], iteration_bounds = array<i64: 1, 2>, scalar_prefetch = 0 : i64, scratch_operands = 0 : i64, tpu.core_type = #tpu.core_type<tc>, window_params = [{transform_indices = @transform_0, window_bounds = array<i64: 64, 16>}, {transform_indices = @transform_1, window_bounds = array<i64: 16, 64>}, {transform_indices = @transform_2, window_bounds = array<i64: 1, 64>}, {transform_indices = @transform_3, window_bounds = array<i64: 1, 64>}, {pipeline_mode = #tpu.pipeline_mode<synchronous>, transform_indices = @transform_4, window_bounds = array<i64: 16, 64>}, {pipeline_mode = #tpu.pipeline_mode<synchronous>, transform_indices = @transform_5, window_bounds = array<i64: 1, 64>}, {transform_indices = @transform_6, window_bounds = array<i64: 64, 256>}]} {
    %c0 = arith.constant 0 : index
    %c0_0 = arith.constant 0 : index
    %0 = vector.load %arg2[%c0, %c0_0] : memref<64x16xf32, #tpu.memory_space<vmem>>, vector<64x16xf32>
    %1 = arith.truncf %0 : vector<64x16xf32> to vector<64x16xbf16>
    %c0_1 = arith.constant 0 : index
    %c0_2 = arith.constant 0 : index
    %2 = vector.load %arg3[%c0_1, %c0_2] : memref<16x64xbf16, #tpu.memory_space<vmem>>, vector<16x64xbf16>
    %cst = arith.constant dense<0.000000e+00> : vector<64x64xf32>
    %3 = tpu.matmul %1, %2, %cst {dimension_numbers = #tpu.dot_dimension_numbers<[1], [0], [0], [1], [0, 0, 1, 1], [], []>} : vector<64x16xbf16>, vector<16x64xbf16>, vector<64x64xf32> -> vector<64x64xf32>
    %c0_3 = arith.constant 0 : index
    %c0_4 = arith.constant 0 : index
    %4 = vector.load %arg4[%c0_3, %c0_4] : memref<1x64xf32, #tpu.memory_space<vmem>>, vector<1x64xf32>
    %5 = vector.broadcast %4 : vector<1x64xf32> to vector<64x64xf32>
    %6 = arith.mulf %3, %5 : vector<64x64xf32>
    %c0_5 = arith.constant 0 : index
    %c0_6 = arith.constant 0 : index
    %7 = vector.load %arg5[%c0_5, %c0_6] : memref<1x64xf32, #tpu.memory_space<vmem>>, vector<1x64xf32>
    %8 = vector.broadcast %7 : vector<1x64xf32> to vector<64x64xf32>
    %9 = arith.addf %6, %8 : vector<64x64xf32>
    %cst_7 = arith.constant 5.000000e-01 : f32
    %10 = vector.broadcast %cst_7 : f32 to vector<64x64xf32>
    %11 = arith.mulf %10, %9 : vector<64x64xf32>
    %cst_8 = arith.constant 0.707106769 : f32
    %12 = vector.broadcast %cst_8 : f32 to vector<64x64xf32>
    %13 = arith.mulf %9, %12 : vector<64x64xf32>
    %14 = math.erf %13 : vector<64x64xf32>
    %cst_9 = arith.constant 1.000000e+00 : f32
    %15 = vector.broadcast %cst_9 : f32 to vector<64x64xf32>
    %16 = arith.addf %15, %14 : vector<64x64xf32>
    %17 = arith.mulf %11, %16 : vector<64x64xf32>
    %18 = arith.truncf %17 : vector<64x64xf32> to vector<64x64xbf16>
    %c0_10 = arith.constant 0 : index
    %c0_11 = arith.constant 0 : index
    %19 = vector.load %arg7[%c0_10, %c0_11] : memref<1x64xf32, #tpu.memory_space<vmem>>, vector<1x64xf32>
    %20 = vector.extract_strided_slice %18 {offsets = [0, 0], sizes = [64, 16], strides = [1, 1]} : vector<64x64xbf16> to vector<64x16xbf16>
    %c0_12 = arith.constant 0 : index
    %c0_13 = arith.constant 0 : index
    %21 = vector.load %arg6[%c0_12, %c0_13] : memref<16x64xbf16, #tpu.memory_space<vmem>>, vector<16x64xbf16>
    %cst_14 = arith.constant dense<0.000000e+00> : vector<64x64xf32>
    %22 = tpu.matmul %20, %21, %cst_14 {dimension_numbers = #tpu.dot_dimension_numbers<[1], [0], [0], [1], [0, 0, 1, 1], [], []>} : vector<64x16xbf16>, vector<16x64xbf16>, vector<64x64xf32> -> vector<64x64xf32>
    %23 = vector.broadcast %19 : vector<1x64xf32> to vector<64x64xf32>
    %24 = arith.addf %22, %23 : vector<64x64xf32>
    %c0_15 = arith.constant 0 : index
    %c0_16 = arith.constant 0 : index
    %25 = vector.load %arg8[%c0_15, %c0_16] : memref<64x256xf32, #tpu.memory_space<vmem>>, vector<64x64xf32>
    tpu.vector_store %arg8[%c0_15, %c0_16], %24 {strides = array<i32>} : memref<64x256xf32, #tpu.memory_space<vmem>>, vector<64x64xf32>,
    %26 = vector.extract_strided_slice %18 {offsets = [0, 16], sizes = [64, 16], strides = [1, 1]} : vector<64x64xbf16> to vector<64x16xbf16>
    %c0_17 = arith.constant 0 : index
    %c0_18 = arith.constant 0 : index
    %27 = vector.load %arg6[%c0_17, %c0_18] : memref<16x64xbf16, #tpu.memory_space<vmem>>, vector<16x64xbf16>
    %cst_19 = arith.constant dense<0.000000e+00> : vector<64x64xf32>
    %28 = tpu.matmul %26, %27, %cst_19 {dimension_numbers = #tpu.dot_dimension_numbers<[1], [0], [0], [1], [0, 0, 1, 1], [], []>} : vector<64x16xbf16>, vector<16x64xbf16>, vector<64x64xf32> -> vector<64x64xf32>
    %29 = vector.broadcast %19 : vector<1x64xf32> to vector<64x64xf32>
    %30 = arith.addf %28, %29 : vector<64x64xf32>
    %c0_20 = arith.constant 0 : index
    %c64 = arith.constant 64 : index
    %31 = vector.load %arg8[%c0_20, %c64] : memref<64x256xf32, #tpu.memory_space<vmem>>, vector<64x64xf32>
    tpu.vector_store %arg8[%c0_20, %c64], %30 {strides = array<i32>} : memref<64x256xf32, #tpu.memory_space<vmem>>, vector<64x64xf32>,
    %32 = vector.extract_strided_slice %18 {offsets = [0, 32], sizes = [64, 16], strides = [1, 1]} : vector<64x64xbf16> to vector<64x16xbf16>
    %c0_21 = arith.constant 0 : index
    %c0_22 = arith.constant 0 : index
    %33 = vector.load %arg6[%c0_21, %c0_22] : memref<16x64xbf16, #tpu.memory_space<vmem>>, vector<16x64xbf16>
    %cst_23 = arith.constant dense<0.000000e+00> : vector<64x64xf32>
    %34 = tpu.matmul %32, %33, %cst_23 {dimension_numbers = #tpu.dot_dimension_numbers<[1], [0], [0], [1], [0, 0, 1, 1], [], []>} : vector<64x16xbf16>, vector<16x64xbf16>, vector<64x64xf32> -> vector<64x64xf32>
    %35 = vector.broadcast %19 : vector<1x64xf32> to vector<64x64xf32>
    %36 = arith.addf %34, %35 : vector<64x64xf32>
    %c0_24 = arith.constant 0 : index
    %c128 = arith.constant 128 : index
    %37 = vector.load %arg8[%c0_24, %c128] : memref<64x256xf32, #tpu.memory_space<vmem>>, vector<64x64xf32>
    tpu.vector_store %arg8[%c0_24, %c128], %36 {strides = array<i32>} : memref<64x256xf32, #tpu.memory_space<vmem>>, vector<64x64xf32>,
    %38 = vector.extract_strided_slice %18 {offsets = [0, 48], sizes = [64, 16], strides = [1, 1]} : vector<64x64xbf16> to vector<64x16xbf16>
    %c0_25 = arith.constant 0 : index
    %c0_26 = arith.constant 0 : index
    %39 = vector.load %arg6[%c0_25, %c0_26] : memref<16x64xbf16, #tpu.memory_space<vmem>>, vector<16x64xbf16>
    %cst_27 = arith.constant dense<0.000000e+00> : vector<64x64xf32>
    %40 = tpu.matmul %38, %39, %cst_27 {dimension_numbers = #tpu.dot_dimension_numbers<[1], [0], [0], [1], [0, 0, 1, 1], [], []>} : vector<64x16xbf16>, vector<16x64xbf16>, vector<64x64xf32> -> vector<64x64xf32>
    %41 = vector.broadcast %19 : vector<1x64xf32> to vector<64x64xf32>
    %42 = arith.addf %40, %41 : vector<64x64xf32>
    %c0_28 = arith.constant 0 : index
    %c192 = arith.constant 192 : index
    %43 = vector.load %arg8[%c0_28, %c192] : memref<64x256xf32, #tpu.memory_space<vmem>>, vector<64x64xf32>
    tpu.vector_store %arg8[%c0_28, %c192], %42 {strides = array<i32>} : memref<64x256xf32, #tpu.memory_space<vmem>>, vector<64x64xf32>,
    return
  }
  func.func @transform_0(%arg0: i32, %arg1: i32) -> (i32, i32) {
    %c0_i32 = arith.constant 0 : i32
    %c0_i32_0 = arith.constant 0 : i32
    return %arg1, %c0_i32 : i32, i32
  }
  func.func @transform_1(%arg0: i32, %arg1: i32) -> (i32, i32) {
    %c0_i32 = arith.constant 0 : i32
    %c0_i32_0 = arith.constant 0 : i32
    return %c0_i32, %arg0 : i32, i32
  }
  func.func @transform_2(%arg0: i32, %arg1: i32) -> (i32, i32) {
    %c0_i32 = arith.constant 0 : i32
    %c0_i32_0 = arith.constant 0 : i32
    return %c0_i32, %arg0 : i32, i32
  }
  func.func @transform_3(%arg0: i32, %arg1: i32) -> (i32, i32) {
    %c0_i32 = arith.constant 0 : i32
    %c0_i32_0 = arith.constant 0 : i32
    return %c0_i32, %arg0 : i32, i32
  }
  func.func @transform_4(%arg0: i32, %arg1: i32) -> (i32, i32) {
    %c0_i32 = arith.constant 0 : i32
    %c0_i32_0 = arith.constant 0 : i32
    %c0_i32_1 = arith.constant 0 : i32
    return %c0_i32, %c0_i32_0 : i32, i32
  }
  func.func @transform_5(%arg0: i32, %arg1: i32) -> (i32, i32) {
    %c0_i32 = arith.constant 0 : i32
    %c0_i32_0 = arith.constant 0 : i32
    %c0_i32_1 = arith.constant 0 : i32
    return %c0_i32, %c0_i32_0 : i32, i32
  }
  func.func @transform_6(%arg0: i32, %arg1: i32) -> (i32, i32) {
    %c0_i32 = arith.constant 0 : i32
    return %arg1, %arg0 : i32, i32
  }
}

</mosaic_0001>

<bundles_post_ra>
// kernel: tpu_custom_call.1
= control target key start
LH: loop header
LB: loop body
LE: loop exit
PB: predicated region body
PF: predicated region fallthrough
CT: control target
= control target key end

     0   :  { %11 = vsyncpa [#allocation3], 0  ;;  %s2128_s0 = inlined_call_operand.vmem [shape: f32[128,16], index: 0, kind: input, shape index: {}]   ;;  %s2129_s1 = inlined_call_operand.vmem [shape: bf16[16,64], index: 1, kind: input, shape index: {}]   ;;  %s2130_s2 = inlined_call_operand.vmem [shape: f32[1,64], index: 2, kind: input, shape index: {}]   ;;  %s2131_s3 = inlined_call_operand.vmem [shape: f32[1,64], index: 3, kind: input, shape index: {}]   ;;  %s2132_s4 = inlined_call_operand.vmem [shape: bf16[16,64], index: 4, kind: input, shape index: {}]   ;;  %s2133_s5 = inlined_call_operand.vmem [shape: f32[1,64], index: 5, kind: input, shape index: {}]   ;;  %s2134_s6 = inlined_call_operand.hbm [shape: f32[128,256], index: 6, kind: output, shape index: {}]  }
   0x1   :  { %13 = vsyncpa [#allocation3 + $0x1], 0  ;;  %s1509_s21 = smov 0   ;;  %s1511_s22 = smov 0  }
   0x2   :  { %s1513_s23 = smov 0   ;;  %s1515_s24 = smov 0  }
   0x3   :  { %s1517_s25 = smov 0   ;;  %s1519_s26 = smov 0  }
   0x4 LB: > { %s1233_s27 = sadd.s32 4294967295, %s1466_s26   ;;  %s1234_s28 = sadd.s32 4294967294, %s1466_s26   ;;  %s1466_s26 = sphi %s1519_s26, %s19_s26   ;;  %s1462_s25 = sphi %s1517_s25, %s2153_s25   ;;  %s1458_s24 = sphi %s1515_s24, %s2152_s24   ;;  %s1454_s23 = sphi %s1513_s23, %s2151_s23   ;;  %s1450_s22 = sphi %s1511_s22, %s2150_s22   ;;  %s1446_s21 = sphi %s1509_s21, %s2149_s21  }
   0x5   : > { %s28_s29 = sadd.s32 1, %s1462_s25  ;;  %s186_s30 = sadd.s32 1, %s1454_s23 }
   0x6   : > { %p29_p0 = scmp.ge.s32.totalorder %s28_s29, 2  ;;  %p196_p1 = scmp.ne.s32.totalorder %s1454_s23, %s1450_s22 }
   0x7   : > { %p197_p2 = scmp.eq.s32.totalorder %s1233_s27, 1  ;;  %p202_p3 = scmp.ne.s32.totalorder %s1450_s22, %s1446_s21 }
   0x8   : > { %s2155_s29 = smov (%p29_p0, %s28_s29), 0  ;;  %p203_p5 = scmp.eq.s32.totalorder %s1234_s28, 1 }
   0x9   : > { %p1549_p4 = por %p197_p2, %p196_p1  ;;  %s181_s8 = ssub.s32 %s1462_s25, %s2155_s29 }
   0xa   : > { %p1240_p6 = scmp.ge.s32.totalorder %s1466_s26, 1  ;;  %p184_p7 = scmp.eq.s32.totalorder %s181_s8, 0 }
   0xb   : > { %p1556_p8 = por %p203_p5, %p202_p3  ;;  %p255_p9 = scmp.lt.s32.totalorder %s1466_s26, 3 }
   0xc   : > { %s1562_s10 = scalar_select %p184_p7, %s1454_s23, %s186_s30  }
   0xd   : > { %p256_p10 = pnand %p1240_p6, %p255_p9 }
   0xe   : > { %s1242_s13 = sshll.u32 (!%p256_p10), %s1458_s24, 3  ;;  %s1468_s8 = smov (!%p256_p10), 112  }
   0xf   : > { %259 = sbr.rel (%p256_p10) target bundleno = 663 (0x297), region = 44  ;;  %p296_p11 = scmp.lt.s32.totalorder (!%p256_p10), %s1242_s13, 15 }
  0x10   : > { %s1469_s11 = smov (!%p256_p10), 80   ;;  %s1470_s12 = smov (!%p256_p10), 96  }
  0x11   : > { %s292_s19 = sand.u32 (!%p256_p10), 1, %s1450_s22   ;;  %s1408_s28 = scalar_lea.hbm (!%p256_p10), %s2134_s6, 256 }
  0x12   : > { %s1241_s20 = sshll.u32 (!%p256_p10), %s292_s19, 7 }
  0x13   : > { %s1966_s30 = scalar_lea.vmem (!%p256_p10), [#allocation2], %s1241_s20 }
  0x14   : > { %v1298_v0 = vld [vmem:[%s2129_s1] sm:$0xff]  ;;  %s2157_s13 = smov (!%p296_p11, %s1242_s13), 15  ;;  %vm334_vm0 = vcmask 130048   ;;  %s1118_s15 = sshll.u32 %s1966_s30, 4  ;;  %s1119_s15 = int_to_ptr.vmem [resolvable:$true] %s1118_s15 }
  0x15   : > { %354 = vmatpush.bf16.msra.mxu0 %v1298_v0  ;;  %1305 = vmatpush.bf16.msra.mxu1 %v1298_v0  ;;  %s1243_s14 = sshll.u32 %s2157_s13, 3  ;;  %v1578_v13 = vld [vmem:[%s2130_s2] ss:$0 sm:$0xff] }
  0x16   : > { %1306 = vmatpush.bf16.msra.mxu2 %v1298_v0  ;;  %1307 = vmatpush.bf16.msra.mxu3 %v1298_v0  ;;  %s299_s17 = scalar_lea.vmem %s2128_s0, %s1243_s14  ;;  %v1583_v14 = vld [vmem:[%s2131_s3] ss:$0 sm:$0xff] }
  0x17   : > { %v314_v1 = vld [vmem:[%s299_s17] sm:$0xff]  ;;  %v315_v2 = vld [vmem:[%s299_s17 + $0x8] sm:$0xff]  ;;  %v316_v3 = vld [vmem:[%s299_s17 + $0x10] sm:$0xff] }
  0x18   : > { %v322_v4 = vpack.c.bf16 %v315_v2, %v314_v1  ;;  %v317_v5 = vld [vmem:[%s299_s17 + $0x18] sm:$0xff]  ;;  %v318_v6 = vld [vmem:[%s299_s17 + $0x20] sm:$0xff]  ;;  %v319_v7 = vld [vmem:[%s299_s17 + $0x28] sm:$0xff] }
  0x19   : > { %v323_v8 = vpack.c.bf16 %v317_v5, %v316_v3  ;;  %v324_v9 = vpack.c.bf16 %v319_v7, %v318_v6  ;;  %v320_v10 = vld [vmem:[%s299_s17 + $0x30] sm:$0xff]  ;;  %v321_v11 = vld [vmem:[%s299_s17 + $0x38] sm:$0xff] }
  0x1a   : > { %1248 = vmatmul.msk.bf16.vlgmr.msra.gmra.mxu0 %vm334_vm0, %v322_v4  ;;  %v325_v12 = vpack.c.bf16 %v321_v11, %v320_v10 }
  0x1b   : > { %1249 = vmatmul.msk.bf16.vlgmr.msra.gmra.mxu1 %vm334_vm0, %v323_v8  ;;  %1250 = vmatmul.msk.bf16.vlgmr.msra.gmra.mxu2 %vm334_vm0, %v324_v9 }
  0x1c   : > { %1251 = vmatmul.msk.bf16.vlgmr.msra.gmra.mxu3 %vm334_vm0, %v325_v12 }
  0x97   : > { %v356_v15 = vpop.f32.mrf.mxu0 }
  0x98   : > { %v380_v16 = vmul.f32 %v1578_v13, %v356_v15  ;;  %v361_v17 = vpop.f32.mrf.mxu1 }
  0x99   : > { %v382_v18 = vmul.f32 %v1578_v13, %v361_v17 }
  0x9a   : > { %v1588_v19 = vadd.f32 %v1583_v14, %v380_v16 }
  0x9b   : > { %v1591_v20 = vadd.f32 %v1583_v14, %v382_v18 }
  0x9c   : > { %v1594_v21 = vmul.f32 0.70710677, %v1588_v19 }
  0x9d   : > { %v1597_v22 = vmul.f32 0.70710677, %v1591_v20 }
  0x9e   : > { %v416_v23 = vmul.f32 %v1594_v21, %v1594_v21  ;;  %v366_v24 = vpop.f32.mrf.mxu2 }
  0x9f   : > { %v496_v25 = vmul.f32 %v1597_v22, %v1597_v22  ;;  %v384_v26 = vmul.f32 %v1578_v13, %v366_v24  ;;  %v371_v27 = vpop.f32.mrf.mxu3  ;;  %v358_v35 = vpop.f32.mrf.mxu0 }
  0xa0   : > { %v1604_v28 = vmin.f32 %v416_v23, 16.0  ;;  %v386_v29 = vmul.f32 %v1578_v13, %v371_v27  ;;  %v381_v43 = vmul.f32 %v1578_v13, %v358_v35  ;;  %v363_v9 = vpop.f32.mrf.mxu1 }
  0xa1   : > { %v1607_v30 = vmin.f32 %v496_v25, 16.0  ;;  %v1610_v31 = vadd.f32 %v1583_v14, %v384_v26  ;;  %v383_v23 = vmul.f32 %v1578_v13, %v363_v9 }
  0xa2   : > { %v429_v32 = vmul.f32 3.8918573e-05, %v1604_v28  ;;  %v1618_v37 = vadd.f32 %v1583_v14, %v386_v29  ;;  %v418_v38 = vmul.f32 2.1237322e-06, %v1604_v28  ;;  %v1635_v53 = vadd.f32 %v1583_v14, %v381_v43 }
  0xa3   : > { %v509_v33 = vmul.f32 3.8918573e-05, %v1607_v30  ;;  %v1615_v34 = vmul.f32 0.70710677, %v1610_v31  ;;  %v498_v42 = vmul.f32 2.1237322e-06, %v1607_v30 }
  0xa4   : > { %v430_v36 = vadd.f32 0.001143296, %v429_v32  ;;  %v1630_v47 = vmul.f32 0.70710677, %v1618_v37  ;;  %v419_v48 = vadd.f32 0.00028619796, %v418_v38 }
  0xa5   : > { %v510_v39 = vadd.f32 0.001143296, %v509_v33  ;;  %v576_v40 = vmul.f32 %v1615_v34, %v1615_v34  ;;  %v499_v51 = vadd.f32 0.00028619796, %v498_v42  ;;  %v1644_v62 = vmul.f32 0.70710677, %v1635_v53 }
  0xa6   : > { %v431_v41 = vmul.f32 %v430_v36, %v1604_v28  ;;  %v656_v56 = vmul.f32 %v1630_v47, %v1630_v47  ;;  %v420_v57 = vmul.f32 %v419_v48, %v1604_v28  ;;  %v1670_v36 = vadd.f32 %v1583_v14, %v383_v23 }
  0xa7   : > { %v511_v44 = vmul.f32 %v510_v39, %v1607_v30  ;;  %v1627_v45 = vmin.f32 %v576_v40, 16.0  ;;  %v500_v61 = vmul.f32 %v499_v51, %v1607_v30  ;;  %v456_v7 = vmul.f32 %v1644_v62, %v1644_v62 }
  0xa8   : > { %v432_v46 = vadd.f32 0.014752088, %v431_v41  ;;  %v1648_v2 = vmin.f32 %v656_v56, 16.0  ;;  %v421_v3 = vadd.f32 0.0036580483, %v420_v57 }
  0xa9   : > { %v512_v49 = vadd.f32 0.014752088, %v511_v44  ;;  %v589_v52 = vmul.f32 3.8918573e-05, %v1627_v45  ;;  %v501_v6 = vadd.f32 0.0036580483, %v500_v61 }
  0xaa   : > { %v433_v50 = vmul.f32 %v432_v46, %v1604_v28  ;;  %v578_v8 = vmul.f32 2.1237322e-06, %v1627_v45  ;;  %v669_v15 = vmul.f32 3.8918573e-05, %v1648_v2  ;;  %v422_v16 = vmul.f32 %v421_v3, %v1604_v28 }
  0xab   : > { %v513_v54 = vmul.f32 %v512_v49, %v1607_v30  ;;  %v590_v59 = vadd.f32 0.001143296, %v589_v52  ;;  %v502_v17 = vmul.f32 %v501_v6, %v1607_v30  ;;  %v1660_v18 = vmin.f32 %v456_v7, 16.0 }
  0xac   : > { %v434_v55 = vadd.f32 0.112945676, %v433_v50  ;;  %v579_v24 = vadd.f32 0.00028619796, %v578_v8  ;;  %v670_v27 = vadd.f32 0.001143296, %v669_v15 }
  0xad   : > { %v514_v58 = vadd.f32 0.112945676, %v513_v54  ;;  %v591_v1 = vmul.f32 %v590_v59, %v1627_v45  ;;  %v423_v29 = vadd.f32 0.05243302, %v422_v16  ;;  %v503_v32 = vadd.f32 0.05243302, %v502_v17 }
  0xae   : > { %v435_v60 = vmul.f32 %v434_v55, %v1604_v28  ;;  %v658_v33 = vmul.f32 2.1237322e-06, %v1648_v2  ;;  %v458_v35 = vmul.f32 2.1237322e-06, %v1660_v18  ;;  %v580_v38 = vmul.f32 %v579_v24, %v1627_v45 }
  0xaf   : > { %v515_v63 = vmul.f32 %v514_v58, %v1607_v30  ;;  %v592_v12 = vadd.f32 0.014752088, %v591_v1  ;;  %v671_v40 = vmul.f32 %v670_v27, %v1648_v2  ;;  %v469_v41 = vmul.f32 3.8918573e-05, %v1660_v18 }
  0xb0   : > { %v436_v0 = vadd.f32 0.4994258, %v435_v60  ;;  %v424_v42 = vmul.f32 %v423_v29, %v1604_v28  ;;  %v504_v44 = vmul.f32 %v503_v32, %v1607_v30  ;;  %v659_v46 = vadd.f32 0.00028619796, %v658_v33  ;;  %v368_v29 = vpop.f32.mrf.mxu2 }
  0xb1   : > { %v516_v4 = vadd.f32 0.4994258, %v515_v63  ;;  %v593_v26 = vmul.f32 %v592_v12, %v1627_v45  ;;  %v459_v48 = vadd.f32 0.00028619796, %v458_v35  ;;  %v1681_v49 = vmul.f32 0.70710677, %v1670_v36 }
  0xb2   : > { %v437_v5 = vmul.f32 %v436_v0, %v1604_v28  ;;  %v581_v50 = vadd.f32 0.0036580483, %v580_v38  ;;  %v672_v52 = vadd.f32 0.014752088, %v671_v40  ;;  %v470_v54 = vadd.f32 0.001143296, %v469_v41 }
  0xb3   : > { %v517_v11 = vmul.f32 %v516_v4, %v1607_v30  ;;  %v594_v39 = vadd.f32 0.112945676, %v593_v26  ;;  %v425_v55 = vadd.f32 0.18741608, %v424_v42  ;;  %v505_v58 = vadd.f32 0.18741608, %v504_v44 }
  0xb4   : > { %v1654_v10 = vadd.f32 1.0, %v437_v5  ;;  %v660_v59 = vmul.f32 %v659_v46, %v1648_v2  ;;  %v460_v60 = vmul.f32 %v459_v48, %v1660_v18  ;;  %v536_v61 = vmul.f32 %v1681_v49, %v1681_v49 }
  0xb5   : > { %v1664_v25 = vadd.f32 1.0, %v517_v11  ;;  %v595_v51 = vmul.f32 %v594_v39, %v1627_v45  ;;  %v582_v63 = vmul.f32 %v581_v50, %v1627_v45  ;;  %v471_v0 = vmul.f32 %v470_v54, %v1660_v18 }
  0xb6   : > { %1372 = vrcp.f32 %v1654_v10  ;;  %v673_v3 = vmul.f32 %v672_v52, %v1648_v2  ;;  %v426_v4 = vmul.f32 %v425_v55, %v1604_v28  ;;  %v506_v8 = vmul.f32 %v505_v58, %v1607_v30 }
  0xb7   : > { %1374 = vrcp.f32 %v1664_v25  ;;  %v596_v1 = vadd.f32 0.4994258, %v595_v51  ;;  %v472_v7 = vadd.f32 0.014752088, %v471_v0  ;;  %v661_v9 = vadd.f32 0.0036580483, %v660_v59 }
  0xb8   : > { %v461_v11 = vadd.f32 0.0036580483, %v460_v60  ;;  %v1699_v12 = vmin.f32 %v536_v61, 16.0  ;;  %v583_v15 = vadd.f32 0.05243302, %v582_v63  ;;  %v1702_v16 = vmul.f32 0.5, %v1588_v19 }
  0xb9   : > { %v1705_v17 = vmul.f32 0.5, %v1591_v20  ;;  %v597_v28 = vmul.f32 %v596_v1, %v1627_v45  ;;  %v674_v23 = vadd.f32 0.112945676, %v673_v3  ;;  %v427_v24 = vadd.f32 1.1283791, %v426_v4  ;;  %v373_v4 = vpop.f32.mrf.mxu3 }
  0xba   : > { %v473_v30 = vmul.f32 %v472_v7, %v1660_v18  ;;  %v1710_v32 = vadd.f32 1.1283791, %v506_v8  ;;  %v662_v33 = vmul.f32 %v661_v9, %v1648_v2  ;;  %v462_v19 = vmul.f32 %v461_v11, %v1660_v18 }
  0xbb   : > { %v538_v35 = vmul.f32 2.1237322e-06, %v1699_v12  ;;  %v448_v20 = vand.u32 2147483647, %v1654_v10  ;;  %v584_v38 = vmul.f32 %v583_v15, %v1627_v45  ;;  %v549_v40 = vmul.f32 3.8918573e-05, %v1699_v12 }
  0xbc   : > { %v1677_v43 = vpop.eup %1372  ;;  %v474_v39 = vadd.f32 0.112945676, %v473_v30  ;;  %v1719_v41 = vadd.f32 1.0, %v597_v28  ;;  %v675_v42 = vmul.f32 %v674_v23, %v1648_v2  ;;  %v385_v44 = vmul.f32 %v1578_v13, %v368_v29 }
  0xbd   : > { %v440_v56 = vmul.f32 %v1677_v43, %v1654_v10  ;;  %v1686_v57 = vpop.eup %1374  ;;  %vm445_vm1 = vweird.f32 %v1677_v43  ;;  %v539_v51 = vadd.f32 0.00028619796, %v538_v35  ;;  %vm444_vm2 = vweird.f32 %v1654_v10 }
  0xbe   : > { %v520_v6 = vmul.f32 %v1686_v57, %v1664_v25  ;;  %v475_v50 = vmul.f32 %v474_v39, %v1660_v18  ;;  %v450_v52 = vand.u32 2147483648, %v1654_v10  ;;  %v528_v54 = vand.u32 2147483647, %v1664_v25  ;;  %vm1732_vm4 = vmor %vm444_vm2, %vm445_vm1 }
  0xbf   : > { %v441_v5 = vsub.f32 1.0, %v440_v56  ;;  %v463_v55 = vadd.f32 0.05243302, %v462_v19  ;;  %vm524_vm3 = vweird.f32 %v1664_v25  ;;  %v663_v56 = vadd.f32 0.05243302, %v662_v33 }
  0xc0   : > { %v521_v27 = vsub.f32 1.0, %v520_v6  ;;  %v476_v58 = vadd.f32 0.4994258, %v475_v50  ;;  %v550_v59 = vadd.f32 0.001143296, %v549_v40  ;;  %vm525_vm5 = vweird.f32 %v1686_v57 }
  0xc1   : > { %v442_v26 = vmul.f32 %v1677_v43, %v441_v5  ;;  %1376 = vrcp.f32 %v1719_v41  ;;  %v676_v61 = vadd.f32 0.4994258, %v675_v42  ;;  %v1739_v10 = vadd.f32 %v1583_v14, %v385_v44  ;;  %vm1757_vm7 = vmor %vm524_vm3, %vm525_vm5 }
  0xc2   : > { %v522_v48 = vmul.f32 %v1686_v57, %v521_v27  ;;  %v477_v1 = vmul.f32 %v476_v58, %v1660_v18  ;;  %v540_v3 = vmul.f32 %v539_v51, %v1699_v12  ;;  %v451_v5 = vor.u32 1.1754944e-38, %v450_v52 }
  0xc3   : > { %v443_v46 = vadd.f32 %v1677_v43, %v442_v26  ;;  %v530_v6 = vand.u32 2147483648, %v1664_v25  ;;  %v585_v7 = vadd.f32 0.18741608, %v584_v38  ;;  %v464_v8 = vmul.f32 %v463_v55, %v1660_v18 }
  0xc4   : > { %v523_v0 = vadd.f32 %v1686_v57, %v522_v48  ;;  %vm449_vm6 = vcmp.eq.f32.partialorder %v448_v20, 8.507059e+37  ;;  %v664_v9 = vmul.f32 %v663_v56, %v1648_v2  ;;  %v1750_v11 = vadd.f32 1.0, %v477_v1 }
  0xc5   : > { %v447_v63 = vsel %vm1732_vm4, %v1677_v43, %v443_v46  ;;  %v551_v43 = vmul.f32 %v550_v59, %v1699_v12  ;;  %v677_v23 = vmul.f32 %v676_v61, %v1648_v2  ;;  %v1763_v26 = vmul.f32 0.70710677, %v1739_v10 }
  0xc6   : > { %v452_v15 = vsel %vm449_vm6, %v451_v5, %v447_v63  ;;  %v387_v27 = vmul.f32 %v1578_v13, %v373_v4  ;;  %v428_v30 = vmul.f32 %v427_v24, %v1594_v21  ;;  %v527_v29 = vsel %vm1757_vm7, %v1686_v57, %v523_v0 }
  0xc7   : > { %1378 = vrcp.f32 %v1750_v11  ;;  %v541_v25 = vadd.f32 0.0036580483, %v540_v3  ;;  %v1771_v33 = vpop.eup %1376  ;;  %vm529_vm8 = vcmp.eq.f32.partialorder %v528_v54, 8.507059e+37  ;;  %v531_v19 = vor.u32 1.1754944e-38, %v530_v6 }
  0xc8   : > { %v586_v35 = vmul.f32 %v585_v7, %v1627_v45  ;;  %v465_v20 = vadd.f32 0.18741608, %v464_v8  ;;  %v453_v38 = vmul.f32 %v452_v15, %v428_v30  ;;  %v665_v39 = vadd.f32 0.18741608, %v664_v9 }
  0xc9   : > { %v552_v40 = vadd.f32 0.014752088, %v551_v43  ;;  %v616_v13 = vmul.f32 %v1763_v26, %v1763_v26  ;;  %v532_v21 = vsel %vm529_vm8, %v531_v19, %v527_v29  ;;  %v1776_v24 = vadd.f32 1.0, %v677_v23 }
  0xca   : > { %v1779_v57 = vmul.f32 0.5, %v1635_v53  ;;  %v1782_v42 = vadd.f32 %v1583_v14, %v387_v27  ;;  %v1786_v44 = vmul.f32 %v1771_v33, %v1719_v41  ;;  %v542_v45 = vmul.f32 %v541_v25, %v1699_v12 }
  0xcb   : > { %v553_v46 = vmul.f32 %v552_v40, %v1699_v12  ;;  %v1790_v48 = vmin.f32 %v616_v13, 16.0  ;;  %v508_v50 = vmul.f32 %v1710_v32, %v1597_v22  ;;  %v1794_v51 = vadd.f32 1.1283791, %v586_v35 }
  0xcc   : > { %v466_v53 = vmul.f32 %v465_v20, %v1660_v18  ;;  %v1798_v14 = vmul.f32 0.70710677, %v1782_v42  ;;  %v1252_v54 = vclamps-f32 %v453_v38, 1.0  ;;  %v1801_v55 = vmul.f32 %v665_v39, %v1648_v2 }
  0xcd   : > { %v1379_v52 = vpop.eup %1378  ;;  %v554_v56 = vadd.f32 0.112945676, %v553_v46  ;;  %v618_v58 = vmul.f32 2.1237322e-06, %v1790_v48  ;;  %v1804_v59 = vmul.f32 %v532_v21, %v508_v50  ;;  %v610_v60 = vand.u32 2147483648, %v1719_v41 }
  0xce   : > { %1380 = vrcp.f32 %v1776_v24  ;;  %v480_v22 = vmul.f32 %v1379_v52, %v1750_v11  ;;  %v601_v18 = vsub.f32 1.0, %v1786_v44  ;;  %v543_v32 = vadd.f32 0.05243302, %v542_v45 }
  0xcf   : > { %v555_v61 = vmul.f32 %v554_v56, %v1699_v12  ;;  %v629_v63 = vmul.f32 3.8918573e-05, %v1790_v48  ;;  %v467_v2 = vadd.f32 1.1283791, %v466_v53  ;;  %v619_v1 = vadd.f32 0.00028619796, %v618_v58 }
  0xd0   : > { %v481_v0 = vsub.f32 1.0, %v480_v22  ;;  %v696_v3 = vmul.f32 %v1798_v14, %v1798_v14  ;;  %v736_v4 = vadd.f32 1.0, %v1252_v54  ;;  %v490_v5 = vand.u32 2147483648, %v1750_v11 }
  0xd1   : > { %v556_v6 = vadd.f32 0.4994258, %v555_v61  ;;  %v630_v7 = vadd.f32 0.001143296, %v629_v63  ;;  %vm485_vm9 = vweird.f32 %v1379_v52  ;;  %v488_v9 = vand.u32 2147483647, %v1750_v11 }
  0xd2   : > { %v482_v8 = vmul.f32 %v1379_v52, %v481_v0  ;;  %v1816_v43 = vmin.f32 %v696_v3, 16.0  ;;  %vm484_vm10 = vweird.f32 %v1750_v11  ;;  %v544_v15 = vmul.f32 %v543_v32, %v1699_v12 }
  0xd3   : > { %v557_v28 = vmul.f32 %v556_v6, %v1699_v12  ;;  %v631_v23 = vmul.f32 %v630_v7, %v1790_v48  ;;  %v620_v29 = vmul.f32 %v619_v1, %v1790_v48  ;;  %vm604_vm11 = vweird.f32 %v1719_v41  ;;  %vm486_vm12 = vmor %vm484_vm10, %vm485_vm9 }
  0xd4   : > { %v1822_v27 = vpop.eup %1380  ;;  %v483_v30 = vadd.f32 %v1379_v52, %v482_v8  ;;  %v698_v25 = vmul.f32 2.1237322e-06, %v1816_v43  ;;  %v709_v19 = vmul.f32 3.8918573e-05, %v1816_v43  ;;  %v468_v35 = vmul.f32 %v467_v2, %v1644_v62 }
  0xd5   : > { %v491_v11 = vor.u32 1.1754944e-38, %v490_v5  ;;  %v1829_v20 = vadd.f32 1.0, %v557_v28  ;;  %v632_v38 = vadd.f32 0.014752088, %v631_v23  ;;  %vm489_vm13 = vcmp.eq.f32.partialorder %v488_v9, 8.507059e+37  ;;  %v1299_v23 = vld [vmem:[%s2132_s4] sm:$0xff] }
  0xd6   : > { %v487_v39 = vsel %vm486_vm12, %v1379_v52, %v483_v30  ;;  %v699_v40 = vadd.f32 0.00028619796, %v698_v25  ;;  %v710_v13 = vadd.f32 0.001143296, %v709_v19  ;;  %v744_v21 = vmul.f32 %v736_v4, %v1702_v16  ;;  %811 = vmatpush.bf16.msrb.mxu1 %v1299_v23 }
  0xd7   : > { %v680_v44 = vmul.f32 %v1822_v27, %v1776_v24  ;;  %v492_v45 = vsel %vm489_vm13, %v491_v11, %v487_v39  ;;  %1382 = vrcp.f32 %v1829_v20  ;;  %v545_v50 = vadd.f32 0.18741608, %v544_v15 }
  0xd8   : > { %v493_v46 = vmul.f32 %v492_v45, %v468_v35  ;;  %v621_v62 = vadd.f32 0.0036580483, %v620_v29  ;;  %v633_v53 = vmul.f32 %v632_v38, %v1790_v48  ;;  %v608_v54 = vand.u32 2147483647, %v1719_v41 }
  0xd9   : > { %v1837_v56 = vor.u32 1.1754944e-38, %v610_v60  ;;  %v700_v52 = vmul.f32 %v699_v40, %v1816_v43  ;;  %v711_v58 = vmul.f32 %v710_v13, %v1816_v43  ;;  %v1254_v16 = vclamps-f32 %v1804_v59, 1.0 }
  0xda   : > { %v602_v22 = vmul.f32 %v1771_v33, %v601_v18  ;;  %v1253_v32 = vclamps-f32 %v493_v46, 1.0  ;;  %v634_v61 = vadd.f32 0.112945676, %v633_v53  ;;  %v752_v63 = vpack.c.bf16 %v744_v21, %v744_v21 }
  0xdb   : > { %v681_v2 = vsub.f32 1.0, %v680_v44  ;;  %v688_v0 = vand.u32 2147483647, %v1776_v24  ;;  %v712_v1 = vadd.f32 0.014752088, %v711_v58  ;;  %vm684_vm14 = vweird.f32 %v1776_v24 }
  0xdc   : > { %v737_v3 = vadd.f32 1.0, %v1253_v32  ;;  %v546_v60 = vmul.f32 %v545_v50, %v1699_v12  ;;  %v622_v4 = vmul.f32 %v621_v62, %v1790_v48  ;;  %v635_v5 = vmul.f32 %v634_v61, %v1790_v48 }
  0xdd   : > { %v1383_v6 = vpop.eup %1382  ;;  %vm605_vm15 = vweird.f32 %v1771_v33  ;;  %v690_v59 = vand.u32 2147483648, %v1776_v24  ;;  %v701_v18 = vadd.f32 0.0036580483, %v700_v52  ;;  %v713_v7 = vmul.f32 %v712_v1, %v1816_v43 }
  0xde   : > { %v738_v8 = vadd.f32 1.0, %v1254_v16  ;;  %v603_v9 = vadd.f32 %v1771_v33, %v602_v22  ;;  %vm1852_vm1 = vcmp.eq.f32.partialorder %v608_v54, 8.507059e+37  ;;  %v745_v12 = vmul.f32 %v737_v3, %v1779_v57  ;;  %vm1864_vm2 = vmor %vm604_vm11, %vm605_vm15 }
  0xdf   : > { %v560_v28 = vmul.f32 %v1383_v6, %v1829_v20  ;;  %v774_v30 = vunpack.c.l.b16 %v752_v63  ;;  %v682_v29 = vmul.f32 %v1822_v27, %v681_v2  ;;  %v636_v25 = vadd.f32 0.4994258, %v635_v5 }
  0xe0   : > { %v714_v19 = vadd.f32 0.112945676, %v713_v7  ;;  %v753_v11 = vpack.c.bf16 %v745_v12, %v745_v12  ;;  %v547_v38 = vadd.f32 1.1283791, %v546_v60  ;;  %v623_v39 = vadd.f32 0.05243302, %v622_v4 }
  0xe1   : > { %v561_v57 = vsub.f32 1.0, %v560_v28  ;;  %v570_v40 = vand.u32 2147483648, %v1829_v20  ;;  %v637_v13 = vmul.f32 %v636_v25, %v1790_v48  ;;  %v702_v21 = vmul.f32 %v701_v18, %v1816_v43 }
  0xe2   : > { %v715_v44 = vmul.f32 %v714_v19, %v1816_v43  ;;  %v775_v45 = vunpack.c.l.b16 %v753_v11  ;;  %vm565_vm3 = vweird.f32 %v1383_v6  ;;  %v568_v41 = vand.u32 2147483647, %v1829_v20 }
  0xe3   : > { %v562_v46 = vmul.f32 %v1383_v6, %v561_v57  ;;  %v607_v50 = vsel %vm1864_vm2, %v1771_v33, %v603_v9  ;;  %vm685_vm4 = vweird.f32 %v1822_v27  ;;  %v1877_v62 = vadd.f32 1.0, %v637_v13 }
  0xe4   : > { %v716_v53 = vadd.f32 0.4994258, %v715_v44  ;;  %vm564_vm5 = vweird.f32 %v1829_v20  ;;  %v624_v52 = vmul.f32 %v623_v39, %v1790_v48  ;;  %v1881_v58 = vpack.c.b16 %v775_v45, %v774_v30  ;;  %vm1897_vm8 = vmor %vm684_vm14, %vm685_vm4 }
  0xe5   : > { %v563_v54 = vadd.f32 %v1383_v6, %v562_v46  ;;  %v683_v16 = vadd.f32 %v1822_v27, %v682_v29  ;;  %vm566_vm6 = vmor %vm564_vm5, %vm565_vm3  ;;  %v571_v22 = vor.u32 1.1754944e-38, %v570_v40  ;;  %1384 = vrcp.f32 %v1877_v62 }
  0xe6   : > { %v703_v32 = vadd.f32 0.05243302, %v702_v21  ;;  %v548_v33 = vmul.f32 %v547_v38, %v1681_v49  ;;  %vm569_vm7 = vcmp.eq.f32.partialorder %v568_v41, 8.507059e+37  ;;  %v717_v63 = vmul.f32 %v716_v53, %v1816_v43  ;;  %844 = vrot.lane.b32.xlu0 %v1881_v58, %s1468_s8  ;;  %1264 = vmatmul.msk.bf16.vlgmr.msrb.gmra.mxu1 %vm334_vm0, %v1881_v58 }
  0xe7   : > { %v567_v61 = vsel %vm566_vm6, %v1383_v6, %v563_v54  ;;  %v746_v20 = vmul.f32 %v738_v8, %v1705_v17  ;;  %v667_v2 = vadd.f32 1.1283791, %v1801_v55  ;;  %v588_v3 = vmul.f32 %v1794_v51, %v1615_v34 }
  0xe8   : > { %v572_v1 = vsel %vm569_vm7, %v571_v22, %v567_v61  ;;  %v625_v4 = vadd.f32 0.18741608, %v624_v52  ;;  %v718_v5 = vadd.f32 1.0, %v717_v63  ;;  %v612_v17 = vsel %vm1852_vm1, %v1837_v56, %v607_v50 }
  0xe9   : > { %v573_v60 = vmul.f32 %v572_v1, %v548_v33  ;;  %v691_v55 = vor.u32 1.1754944e-38, %v690_v59  ;;  %v704_v6 = vmul.f32 %v703_v32, %v1816_v43  ;;  %v687_v18 = vsel %vm1897_vm8, %v1822_v27, %v683_v16 }
  0xea   : > { %vm689_vm9 = vcmp.eq.f32.partialorder %v688_v0, 8.507059e+37  ;;  %1386 = vrcp.f32 %v718_v5  ;;  %v754_v51 = vpack.c.bf16 %v746_v20, %v746_v20  ;;  %v668_v8 = vmul.f32 %v667_v2, %v1630_v47 }
  0xeb   : > { %v1255_v7 = vclamps-f32 %v573_v60, 1.0  ;;  %v1385_v34 = vpop.eup %1384  ;;  %v403_v9 = vmul.f32 0.5, %v1670_v36  ;;  %v613_v15 = vmul.f32 %v612_v17, %v588_v3  ;;  %v626_v59 = vmul.f32 %v625_v4, %v1790_v48 }
  0xec   : > { %v640_v12 = vmul.f32 %v1385_v34, %v1877_v62  ;;  %v692_v28 = vsel %vm689_vm9, %v691_v55, %v687_v18  ;;  %vm644_vm10 = vweird.f32 %v1877_v62  ;;  %v650_v24 = vand.u32 2147483648, %v1877_v62 }
  0xed   : > { %v739_v56 = vadd.f32 1.0, %v1255_v7  ;;  %v705_v27 = vadd.f32 0.18741608, %v704_v6  ;;  %vm645_vm11 = vweird.f32 %v1385_v34  ;;  %v648_v30 = vand.u32 2147483647, %v1877_v62 }
  0xee   : > { %v641_v23 = vsub.f32 1.0, %v640_v12  ;;  %1007 = vrot.lane.b32.xlu0 %v1881_v58, %s1469_s11  ;;  %v776_v47 = vunpack.c.l.b16 %v754_v51  ;;  %v1256_v48 = vclamps-f32 %v613_v15, 1.0  ;;  %v627_v25 = vadd.f32 1.1283791, %v626_v59  ;;  %vm1923_vm12 = vmor %vm644_vm10, %vm645_vm11  ;;  %v1301_v59 = vld [vmem:[%s2132_s4] sm:$0xff] }
  0xef   : > { %v747_v0 = vmul.f32 %v739_v56, %v403_v9  ;;  %v693_v35 = vmul.f32 %v692_v28, %v668_v8  ;;  %v651_v38 = vor.u32 1.1754944e-38, %v650_v24  ;;  %v706_v57 = vmul.f32 %v705_v27, %v1816_v43  ;;  %975 = vmatpush.bf16.msrb.mxu3 %v1301_v59  ;;  %v1962_v27 = vld [vmem:[%s2133_s5] ss:$0 sm:$0xff] }
  0xf0   : > { %v1387_v36 = vpop.eup %1386  ;;  %v642_v19 = vmul.f32 %v1385_v34, %v641_v23  ;;  %vm649_vm13 = vcmp.eq.f32.partialorder %v648_v30, 8.507059e+37  ;;  %v730_v21 = vand.u32 2147483648, %v718_v5  ;;  %vm724_vm14 = vweird.f32 %v718_v5 }
  0xf1   : > { %v755_v29 = vpack.c.bf16 %v747_v0, %v747_v0  ;;  %v720_v39 = vmul.f32 %v1387_v36, %v718_v5  ;;  %vm725_vm15 = vweird.f32 %v1387_v36  ;;  %v728_v45 = vand.u32 2147483647, %v718_v5 }
  0xf2   : > { %v643_v13 = vadd.f32 %v1385_v34, %v642_v19  ;;  %v740_v46 = vadd.f32 1.0, %v1256_v48  ;;  %v628_v41 = vmul.f32 %v627_v25, %v1763_v26  ;;  %v1258_v53 = vclamps-f32 %v693_v35, 1.0  ;;  %vm726_vm1 = vmor %vm724_vm14, %vm725_vm15 }
  0xf3   : > { %v777_v40 = vunpack.c.l.b16 %v755_v29  ;;  %v721_v44 = vsub.f32 1.0, %v720_v39  ;;  %v707_v52 = vadd.f32 1.1283791, %v706_v57  ;;  %v404_v16 = vmul.f32 0.5, %v1610_v31 }
  0xf4   : > { %v647_v50 = vsel %vm1923_vm12, %v1385_v34, %v643_v13  ;;  %v731_v32 = vor.u32 1.1754944e-38, %v730_v21  ;;  %vm729_vm2 = vcmp.eq.f32.partialorder %v728_v45, 8.507059e+37  ;;  %v742_v63 = vadd.f32 1.0, %v1258_v53 }
  0xf5   : > { %v783_v62 = vpack.c.b16 %v777_v40, %v776_v47  ;;  %v652_v54 = vsel %vm649_vm13, %v651_v38, %v647_v50  ;;  %v722_v43 = vmul.f32 %v1387_v36, %v721_v44  ;;  %v748_v26 = vmul.f32 %v740_v46, %v404_v16 }
  0xf6   : > { %v653_v22 = vmul.f32 %v652_v54, %v628_v41  ;;  %v708_v20 = vmul.f32 %v707_v52, %v1798_v14  ;;  %v405_v49 = vmul.f32 0.5, %v1739_v10  ;;  %v406_v31 = vmul.f32 0.5, %v1618_v37 }
  0xf7   : > { %846 = vrot.lane.b32.xlu1 %v783_v62, %s1468_s8  ;;  %1265 = vmatmul.msk.bf16.gmra.mxu1 %vm334_vm0, %v783_v62  ;;  %v723_v33 = vadd.f32 %v1387_v36, %v722_v43  ;;  %v756_v4 = vpack.c.bf16 %v748_v26, %v748_v26  ;;  %v407_v18 = vmul.f32 0.5, %v1782_v42  ;;  %v1300_v42 = vld [vmem:[%s2132_s4] sm:$0xff]  ;;  %vm833_vm3 = vcmask 523264  }
  0xf8   : > { %v1257_v61 = vclamps-f32 %v653_v22, 1.0  ;;  %v750_v17 = vmul.f32 %v742_v63, %v406_v31  ;;  %877 = vmatpush.bf16.msrb.mxu2 %v1300_v42 }
  0xf9   : > { %v727_v2 = vsel %vm726_vm1, %v1387_v36, %v723_v33  ;;  %v778_v34 = vunpack.c.l.b16 %v756_v4 }
  0xfa   : > { %v741_v1 = vadd.f32 1.0, %v1257_v61  ;;  %v732_v3 = vsel %vm729_vm2, %v731_v32, %v727_v2  ;;  %v758_v51 = vpack.c.bf16 %v750_v17, %v750_v17 }
  0xfb   : > { %v733_v60 = vmul.f32 %v732_v3, %v708_v20 }
  0xfc   : > { %v749_v5 = vmul.f32 %v741_v1, %v405_v49  ;;  %v780_v37 = vunpack.c.l.b16 %v758_v51 }
  0xfd   : > { %v1259_v55 = vclamps-f32 %v733_v60, 1.0 }
  0xfe   : > { %v757_v6 = vpack.c.bf16 %v749_v5, %v749_v5 }
  0xff   : > { %1009 = vrot.lane.b32.xlu1 %v783_v62, %s1469_s11  ;;  %v743_v7 = vadd.f32 1.0, %v1259_v55 }
 0x100   : > { %v779_v14 = vunpack.c.l.b16 %v757_v6 }
 0x101   : > { %v751_v8 = vmul.f32 %v743_v7, %v407_v18 }
 0x102   : > { %v784_v10 = vpack.c.b16 %v779_v14, %v778_v34 }
 0x103   : > { %v759_v9 = vpack.c.bf16 %v751_v8, %v751_v8 }
 0x104   : > { %848 = vrot.lane.b32.xlu2 %v784_v10, %s1468_s8  ;;  %1011 = vrot.lane.b32.xlu0 %v784_v10, %s1469_s11 }
 0x105   : > { %v781_v15 = vunpack.c.l.b16 %v759_v9 }
 0x107   : > { %1266 = vmatmul.msk.bf16.gmra.mxu1 %vm334_vm0, %v784_v10  ;;  %v785_v56 = vpack.c.b16 %v781_v15, %v780_v37 }
 0x109   : > { %850 = vrot.lane.b32.xlu1 %v785_v56, %s1468_s8  ;;  %s1471_s8 = smov 64  }
 0x10c   : > { %942 = vrot.lane.b32.xlu2 %v1881_v58, %s1470_s12  ;;  %1013 = vrot.lane.b32.xlu0 %v785_v56, %s1469_s11  ;;  %v1302_v58 = vld [vmem:[%s2132_s4] sm:$0xff]  ;;  %s1304_s11 = sshll.u32 %s1458_s24, 7  ;;  %s1103_s24 = scalar_lea.sflag [#allocation3], %s292_s19 }
 0x10d   : > { %1040 = vmatpush.bf16.msrb.mxu0 %v1302_v58  ;;  %s1117_s14 = scalar_lea.hbm %s2134_s6, %s1304_s11 }
 0x10e   : > { %s1120_s16 = sshll.u32 %s1117_s14, 4  ;;  %s1121_s16 = int_to_ptr.hbm [resolvable:$true] %s1120_s16 }
 0x10f   : > { %s1402_s17 = sshra.s32 %s1121_s16, 4  ;;  %s1403_s17 = int_to_ptr.hbm [resolvable:$true] %s1402_s17 }
 0x110   : > { %s1404_s18 = scalar_lea.hbm %s1403_s17, 128  ;;  %p1409_p1 = scmp.lt.s32.totalorder %s1403_s17, %s2134_s6 }
 0x111   : > { %946 = vrot.lane.b32.xlu1 %v784_v10, %s1470_s12  ;;  %p1405_p12 = scmp.ne.s32.totalorder %s1403_s17, %s1404_s18  ;;  %p1410_p2 = scmp.lt.s32.totalorder %s1408_s28, %s1404_s18 }
 0x113   : > { %p1406_p13 = pnand %p1405_p12, %p1549_p4  ;;  %p1411_p3 = por %p1410_p2, %p1409_p1 }
 0x114   : > { %944 = vrot.lane.b32.xlu2 %v783_v62, %s1470_s12 }
 0x115   : > { %p1407_p0 = pneg %p1406_p13 }
 0x117   : > { %1267 = vmatmul.msk.bf16.gmra.mxu1 %vm334_vm0, %v785_v56  ;;  %p1412_p5 = pnand %p1411_p3, %p1407_p0 }
 0x11c   : > { %948 = vrot.lane.b32.xlu2 %v785_v56, %s1470_s12 }
 0x158   : > { %v845_v12 = vpop.permute.xlu0 %844 }
 0x159   : > { %1272 = vmatmul.msk.bf16.vlgmr.msrb.gmra.mxu2 %vm334_vm0, %v845_v12 }
 0x15e   : > { %v849_v28 = vpop.permute.xlu2 %848 }
 0x160   : > { %v1008_v24 = vpop.permute.xlu0 %1007 }
 0x161   : > { %1288 = vmatmul.msk.bf16.vlgmr.msrb.gmra.mxu0 %vm334_vm0, %v1008_v24 }
 0x163   : > { %v813_v0 = vpop.f32.mrf.mxu1 }
 0x164   : > { %v814_v23 = vadd.f32 %v1962_v27, %v813_v0 }
 0x166   : > { %v943_v30 = vpop.permute.xlu2 %942  ;;  %834 = vst.msk [vmem:[%s1966_s30] sm:$0xff] %vm833_vm3, %v814_v23 }
 0x167   : > { %1280 = vmatmul.msk.bf16.vlgmr.msrb.gmra.mxu3 %vm334_vm0, %v943_v30 }
 0x169   : > { %v847_v47 = vpop.permute.xlu1 %846 }
 0x16a   : > { %1273 = vmatmul.msk.bf16.gmra.mxu2 %vm334_vm0, %v847_v47 }
 0x16b   : > { %v815_v36 = vpop.f32.mrf.mxu1 }
 0x16c   : > { %v816_v48 = vadd.f32 %v1962_v27, %v815_v36 }
 0x16e   : > { %835 = vst.msk [vmem:[%s1966_s30 + $0x10] sm:$0xff] %vm833_vm3, %v816_v48  ;;  %v945_v35 = vpop.permute.xlu2 %944 }
 0x171   : > { %v1010_v29 = vpop.permute.xlu1 %1009 }
 0x172   : > { %1289 = vmatmul.msk.bf16.gmra.mxu0 %vm334_vm0, %v1010_v29 }
 0x174   : > { %v818_v25 = vpop.f32.mrf.mxu1 }
 0x175   : > { %v819_v19 = vadd.f32 %v1962_v27, %v818_v25 }
 0x176   : > { %v1012_v39 = vpop.permute.xlu0 %1011  ;;  %v949_v62 = vpop.permute.xlu2 %948 }
 0x177   : > { %836 = vst.msk [vmem:[%s1966_s30 + $0x20] sm:$0xff] %vm833_vm3, %v819_v19  ;;  %1281 = vmatmul.msk.bf16.gmra.mxu3 %vm334_vm0, %v945_v35 }
 0x17a   : > { %1274 = vmatmul.msk.bf16.gmra.mxu2 %vm334_vm0, %v849_v28 }
 0x17b   : > { %v851_v11 = vpop.permute.xlu1 %850 }
 0x17c   : > { %v820_v38 = vpop.f32.mrf.mxu1 }
 0x17d   : > { %v821_v57 = vadd.f32 %v1962_v27, %v820_v38 }
 0x17e   : > { %v1014_v46 = vpop.permute.xlu0 %1013 }
 0x17f   : > { %837 = vst.msk [vmem:[%s1966_s30 + $0x30] sm:$0xff] %vm833_vm3, %v821_v57 }
 0x182   : > { %1290 = vmatmul.msk.bf16.gmra.mxu0 %vm334_vm0, %v1012_v39 }
 0x183   : > { %v947_v13 = vpop.permute.xlu1 %946 }
 0x184   : > { %v823_v40 = vpop.f32.mrf.mxu1 }
 0x185   : > { %v824_v21 = vadd.f32 %v1962_v27, %v823_v40 }
 0x187   : > { %838 = vst.msk [vmem:[%s1966_s30 + $0x40] sm:$0xff] %vm833_vm3, %v824_v21  ;;  %1282 = vmatmul.msk.bf16.gmra.mxu3 %vm334_vm0, %v947_v13 }
 0x18a   : > { %1275 = vmatmul.msk.bf16.gmra.mxu2 %vm334_vm0, %v851_v11 }
 0x18c   : > { %v825_v44 = vpop.f32.mrf.mxu1 }
 0x18d   : > { %v826_v45 = vadd.f32 %v1962_v27, %v825_v44 }
 0x18f   : > { %839 = vst.msk [vmem:[%s1966_s30 + $0x50] sm:$0xff] %vm833_vm3, %v826_v45 }
 0x192   : > { %1291 = vmatmul.msk.bf16.gmra.mxu0 %vm334_vm0, %v1014_v46 }
 0x194   : > { %v828_v41 = vpop.f32.mrf.mxu1 }
 0x195   : > { %v829_v50 = vadd.f32 %v1962_v27, %v828_v41 }
 0x197   : > { %840 = vst.msk [vmem:[%s1966_s30 + $0x60] sm:$0xff] %vm833_vm3, %v829_v50  ;;  %1283 = vmatmul.msk.bf16.gmra.mxu3 %vm334_vm0, %v949_v62  ;;  %vm931_vm0 = vcmask 1048064  }
 0x19c   : > { %v830_v53 = vpop.f32.mrf.mxu1 }
 0x19d   : > { %v831_v54 = vadd.f32 %v1962_v27, %v830_v53 }
 0x19f   : > { %841 = vst.msk [vmem:[%s1966_s30 + $0x70] sm:$0xff] %vm833_vm3, %v831_v54 }
 0x1dc   : > { %v879_v52 = vpop.f32.mrf.mxu2 }
 0x1dd   : > { %v880_v43 = vadd.f32 %v1962_v27, %v879_v52 }
 0x1de   : > { %v1042_v16 = vpop.f32.mrf.mxu0 }
 0x1df   : > { %v1043_v22 = vadd.f32 %v1962_v27, %v1042_v16  ;;  %907 = vrot.lane.b32.xlu0 %v880_v43, %s1471_s8 }
 0x1e1   : > { %1070 = vrot.lane.b32.xlu2 %v1043_v22, %s1471_s8 }
 0x1e4   : > { %v881_v32 = vpop.f32.mrf.mxu2 }
 0x1e5   : > { %v882_v33 = vadd.f32 %v1962_v27, %v881_v32 }
 0x1e6   : > { %v1044_v26 = vpop.f32.mrf.mxu0 }
 0x1e7   : > { %v1045_v61 = vadd.f32 %v1962_v27, %v1044_v26  ;;  %909 = vrot.lane.b32.xlu1 %v882_v33, %s1471_s8 }
 0x1e9   : > { %1072 = vrot.lane.b32.xlu0 %v1045_v61, %s1471_s8 }
 0x1ea   : > { %v977_v63 = vpop.f32.mrf.mxu3 }
 0x1eb   : > { %v978_v20 = vadd.f32 %v1962_v27, %v977_v63 }
 0x1ed   : > { %v884_v2 = vpop.f32.mrf.mxu2  ;;  %997 = vst.msk [vmem:[%s1966_s30 + $0x8] sm:$0xff] %vm833_vm3, %v978_v20 }
 0x1ee   : > { %v885_v49 = vadd.f32 %v1962_v27, %v884_v2 }
 0x1ef   : > { %v1047_v1 = vpop.f32.mrf.mxu0 }
 0x1f0   : > { %v1048_v3 = vadd.f32 %v1962_v27, %v1047_v1  ;;  %911 = vrot.lane.b32.xlu2 %v885_v49, %s1471_s8 }
 0x1f2   : > { %1074 = vrot.lane.b32.xlu1 %v1048_v3, %s1471_s8  ;;  %v979_v31 = vpop.f32.mrf.mxu3 }
 0x1f3   : > { %v980_v60 = vadd.f32 %v1962_v27, %v979_v31 }
 0x1f5   : > { %v886_v4 = vpop.f32.mrf.mxu2  ;;  %998 = vst.msk [vmem:[%s1966_s30 + $0x18] sm:$0xff] %vm833_vm3, %v980_v60 }
 0x1f6   : > { %v887_v5 = vadd.f32 %v1962_v27, %v886_v4 }
 0x1f7   : > { %v1049_v17 = vpop.f32.mrf.mxu0 }
 0x1f8   : > { %v1050_v55 = vadd.f32 %v1962_v27, %v1049_v17  ;;  %913 = vrot.lane.b32.xlu0 %v887_v5, %s1471_s8 }
 0x1fa   : > { %1076 = vrot.lane.b32.xlu2 %v1050_v55, %s1471_s8  ;;  %v982_v6 = vpop.f32.mrf.mxu3 }
 0x1fb   : > { %v983_v18 = vadd.f32 %v1962_v27, %v982_v6 }
 0x1fd   : > { %v889_v7 = vpop.f32.mrf.mxu2  ;;  %999 = vst.msk [vmem:[%s1966_s30 + $0x28] sm:$0xff] %vm833_vm3, %v983_v18 }
 0x1fe   : > { %v890_v34 = vadd.f32 %v1962_v27, %v889_v7 }
 0x1ff   : > { %v1052_v14 = vpop.f32.mrf.mxu0 }
 0x200   : > { %v1053_v51 = vadd.f32 %v1962_v27, %v1052_v14  ;;  %915 = vrot.lane.b32.xlu1 %v890_v34, %s1471_s8 }
 0x202   : > { %1078 = vrot.lane.b32.xlu0 %v1053_v51, %s1471_s8  ;;  %v984_v8 = vpop.f32.mrf.mxu3 }
 0x203   : > { %v985_v10 = vadd.f32 %v1962_v27, %v984_v8 }
 0x205   : > { %v891_v9 = vpop.f32.mrf.mxu2  ;;  %1000 = vst.msk [vmem:[%s1966_s30 + $0x38] sm:$0xff] %vm833_vm3, %v985_v10 }
 0x206   : > { %v892_v37 = vadd.f32 %v1962_v27, %v891_v9 }
 0x207   : > { %v1054_v15 = vpop.f32.mrf.mxu0 }
 0x208   : > { %917 = vrot.lane.b32.xlu2 %v892_v37, %s1471_s8  ;;  %v1055_v25 = vadd.f32 %v1962_v27, %v1054_v15 }
 0x20a   : > { %v987_v56 = vpop.f32.mrf.mxu3 }
 0x20b   : > { %v988_v42 = vadd.f32 %v1962_v27, %v987_v56 }
 0x20d   : > { %v894_v59 = vpop.f32.mrf.mxu2  ;;  %1001 = vst.msk [vmem:[%s1966_s30 + $0x48] sm:$0xff] %vm833_vm3, %v988_v42 }
 0x20e   : > { %v895_v58 = vadd.f32 %v1962_v27, %v894_v59 }
 0x20f   : > { %v1057_v12 = vpop.f32.mrf.mxu0 }
 0x210   : > { %v1058_v28 = vadd.f32 %v1962_v27, %v1057_v12  ;;  %919 = vrot.lane.b32.xlu0 %v895_v58, %s1471_s8 }
 0x212   : > { %1082 = vrot.lane.b32.xlu2 %v1058_v28, %s1471_s8  ;;  %v989_v24 = vpop.f32.mrf.mxu3 }
 0x213   : > { %v990_v0 = vadd.f32 %v1962_v27, %v989_v24 }
 0x215   : > { %v896_v23 = vpop.f32.mrf.mxu2  ;;  %1002 = vst.msk [vmem:[%s1966_s30 + $0x58] sm:$0xff] %vm833_vm3, %v990_v0 }
 0x216   : > { %v897_v30 = vadd.f32 %v1962_v27, %v896_v23 }
 0x217   : > { %v1059_v47 = vpop.f32.mrf.mxu0 }
 0x218   : > { %v1060_v36 = vadd.f32 %v1962_v27, %v1059_v47  ;;  %921 = vrot.lane.b32.xlu1 %v897_v30, %s1471_s8 }
 0x21a   : > { %1084 = vrot.lane.b32.xlu0 %v1060_v36, %s1471_s8  ;;  %v992_v48 = vpop.f32.mrf.mxu3 }
 0x21b   : > { %v993_v29 = vadd.f32 %v1962_v27, %v992_v48 }
 0x21d   : > { %1003 = vst.msk [vmem:[%s1966_s30 + $0x68] sm:$0xff] %vm833_vm3, %v993_v29 }
 0x220   : > { %1080 = vrot.lane.b32.xlu1 %v1055_v25, %s1471_s8 }
 0x222   : > { %v994_v19 = vpop.f32.mrf.mxu3 }
 0x223   : > { %v995_v35 = vadd.f32 %v1962_v27, %v994_v19 }
 0x225   : > { %1004 = vst.msk [vmem:[%s1966_s30 + $0x78] sm:$0xff] %vm833_vm3, %v995_v35 }
 0x23b   : > { %v1071_v11 = vpop.permute.xlu2 %1070 }
 0x23c   : > { %1094 = vst.msk [vmem:[%s1966_s30 + $0x8] sm:$0xff] %vm931_vm0, %v1071_v11 }
 0x24a   : > { %v912_v38 = vpop.permute.xlu2 %911 }
 0x24b   : > { %934 = vst.msk [vmem:[%s1966_s30 + $0x20] sm:$0xff] %vm931_vm0, %v912_v38 }
 0x251   : > { %v908_v57 = vpop.permute.xlu0 %907 }
 0x252   : > { %932 = vst.msk [vmem:[%s1966_s30] sm:$0xff] %vm931_vm0, %v908_v57 }
 0x254   : > { %v1077_v39 = vpop.permute.xlu2 %1076 }
 0x255   : > { %1097 = vst.msk [vmem:[%s1966_s30 + $0x38] sm:$0xff] %vm931_vm0, %v1077_v39 }
 0x259   : > { %v910_v27 = vpop.permute.xlu1 %909 }
 0x25a   : > { %933 = vst.msk [vmem:[%s1966_s30 + $0x10] sm:$0xff] %vm931_vm0, %v910_v27 }
 0x25b   : > { %v1073_v40 = vpop.permute.xlu0 %1072 }
 0x25c   : > { %1095 = vst.msk [vmem:[%s1966_s30 + $0x18] sm:$0xff] %vm931_vm0, %v1073_v40 }
 0x262   : > { %v918_v13 = vpop.permute.xlu2 %917 }
 0x263   : > { %937 = vst.msk [vmem:[%s1966_s30 + $0x50] sm:$0xff] %vm931_vm0, %v918_v13 }
 0x264   : > { %v1075_v21 = vpop.permute.xlu1 %1074 }
 0x265   : > { %1096 = vst.msk [vmem:[%s1966_s30 + $0x28] sm:$0xff] %vm931_vm0, %v1075_v21 }
 0x26a   : > { %v914_v44 = vpop.permute.xlu0 %913 }
 0x26b   : > { %935 = vst.msk [vmem:[%s1966_s30 + $0x30] sm:$0xff] %vm931_vm0, %v914_v44 }
 0x26c   : > { %v1083_v45 = vpop.permute.xlu2 %1082 }
 0x26d   : > { %1100 = vst.msk [vmem:[%s1966_s30 + $0x68] sm:$0xff] %vm931_vm0, %v1083_v45 }
 0x272   : > { %v916_v46 = vpop.permute.xlu1 %915 }
 0x273   : > { %936 = vst.msk [vmem:[%s1966_s30 + $0x40] sm:$0xff] %vm931_vm0, %v916_v46 }
 0x274   : > { %v1079_v41 = vpop.permute.xlu0 %1078 }
 0x275   : > { %1098 = vst.msk [vmem:[%s1966_s30 + $0x48] sm:$0xff] %vm931_vm0, %v1079_v41 }
 0x282   : > { %v920_v50 = vpop.permute.xlu0 %919 }
 0x283   : > { %938 = vst.msk [vmem:[%s1966_s30 + $0x60] sm:$0xff] %vm931_vm0, %v920_v50 }
 0x28a   : > { %v922_v62 = vpop.permute.xlu1 %921 }
 0x28b   : > { %939 = vst.msk [vmem:[%s1966_s30 + $0x70] sm:$0xff] %vm931_vm0, %v922_v62 }
 0x28c   : > { %v1085_v53 = vpop.permute.xlu0 %1084 }
 0x28d   : > { %1101 = vst.msk [vmem:[%s1966_s30 + $0x78] sm:$0xff] %vm931_vm0, %v1085_v53 }
 0x292   : > { %v1081_v54 = vpop.permute.xlu1 %1080 }
 0x293   : > { %1099 = vst.msk [vmem:[%s1966_s30 + $0x58] sm:$0xff] %vm931_vm0, %v1081_v54 }
 0x294   : > { %1415 = shalt.err (!%p1412_p5)
}
 0x295   : > { %s1472_s19 = smov 256   ;;  %s1473_s30 = smov 16  }
 0x296   : > { %1308 = dma.vmem_to_hbm [thread:$0]  (%p1549_p4), %s1119_s15, 2048, %s1121_s16, %s1103_s24, %s1472_s19, %s1472_s19, %s1473_s30  }
 0x297 PF: > { %p1314_p6 = scmp.ge.s32.totalorder %s1466_s26, 2  ;;  %s1135_s12 = sand.u32 1, %s1446_s21  }
 0x298   : > { %s1136_s13 = scalar_lea.sflag [#allocation3], %s1135_s12 }
 0x299   : > { %p1311_p7 = pnand %p1314_p6, %p1556_p8 }
 0x29b   : > { %p1312_p9 = pneg %p1311_p7 }
 0x29d   : > { %1441 = dma.done.wait (%p1312_p9), %s1136_s13, 2048  }
 0x29e   : > { %1443 = vsyncadd (%p1312_p9), %s1136_s13, 4294965248  ;;  %s19_s26 = sadd.s32 1, %s1466_s26   ;;  %s2149_s21 = smov %s1450_s22 }
 0x29f   : > { %p16_p10 = scmp.ge.s32.totalorder %s19_s26, 4   ;;  %s2150_s22 = smov %s1454_s23 }
 0x2a0   : > { %s2151_s23 = smov %s1562_s10  ;;  %s2152_s24 = smov %s1462_s25 }
 0x2a1   : > { %s2153_s25 = smov %s2155_s29  ;;  %18 = sbr.rel (!%p16_p10) target bundleno = 4 (0x4), region = 88 }
 0x2a6   :  { %1142 = vsyncpa [#allocation3], 1 }
 0x2a7   :  { %1144 = vsyncpa [#allocation3 + $0x1], 1 }

</bundles_post_ra>
